<compile_context>
chip_gen: v5e
topology: v5e:2x2
jax: 0.10.0
libtpu: 0.0.40
codegen_flags: <defaults>
</compile_context>

<pallas_src>
import jax
import jax.numpy as jnp
from jax.experimental import pallas as pl
from jax.experimental.pallas import tpu as pltpu


def _round_up(x, n):
    return ((x + n - 1) // n) * n


def _make_anfis_kernel(num_mfs, output_dim):
    def kernel(x_ref, c_ref, n_ref, w_ref, o_ref):
        # x_ref: (TB, D)     c_ref/n_ref: (M, D)   (row m = params of MF m)
        # w_ref: (M, D, O+1) augmented consequents (last column = ones)
        # o_ref: (TB, O)
        x = x_ref[...]
        raw = None
        for m in range(num_mfs):                     # static unroll; M is small
            c_m = c_ref[pl.ds(m, 1), :]              # (1, D)
            n_m = n_ref[pl.ds(m, 1), :]              # (1, D) = -1/(2*sigma^2+eps)
            diff = x - c_m
            memb = jnp.exp(diff * diff * n_m)        # (TB, D)
            part = jnp.dot(memb, w_ref[m],
                           preferred_element_type=jnp.float32)  # (TB, O+1)
            raw = part if raw is None else raw + part
        # Column `output_dim` of the augmented weights is the ones column,
        # so raw[:, O] == sum of all D*M memberships per row.
        denom = raw[:, output_dim:output_dim + 1] + 1e-6        # (TB, 1)
        inv = pl.reciprocal(denom, approx=False)  # exact; approx=True only with looser tol
        o_ref[...] = raw[:, :output_dim] * inv
    return kernel


def prepare_anfis_params(centers, sigmas, consequents):
    """One-time re-layout of the ANFIS parameters into the kernel layout.

    Hoist this out of the per-call path (parameters rarely change).
      centers, sigmas: (D, M);  consequents: (D*M, O)
    Returns:
      c_pm  (M, D)      : centers.T
      n_pm  (M, D)      : -1 / (2*sigma^2 + 1e-6), transposed
      w_aug (M, D, O+1) : w_aug[m, j, :O] = consequents[j*M + m], w_aug[..., O] = 1
    """
    D, M = centers.shape
    R, O = consequents.shape
    assert R == D * M, "consequents rows must equal input_dim * num_mfs"

    centers = centers.astype(jnp.float32)
    sigmas = sigmas.astype(jnp.float32)
    consequents = consequents.astype(jnp.float32)

    c_pm = centers.T                                              # (M, D)
    n_pm = (-1.0 / (2.0 * sigmas ** 2 + 1e-6)).T                  # (M, D)
    # rule k = j*M + m  (torch .view ordering)  ->  w_aug[m, j, :]
    w_pm = jnp.transpose(consequents.reshape(D, M, O), (1, 0, 2))  # (M, D, O)
    ones = jnp.ones((M, D, 1), jnp.float32)
    w_aug = jnp.concatenate([w_pm, ones], axis=2)                  # (M, D, O+1)
    return c_pm, n_pm, w_aug


def anfis_forward_prepared(x, c_pm, n_pm, w_aug, *, block_b=512):
    """x: (B, D) f32; parameters already in kernel layout (see prepare_anfis_params)."""
    B, D = x.shape
    M, D2, O_aug = w_aug.shape
    assert D2 == D
    O = O_aug - 1

    x = x.astype(jnp.float32)

    # --- batch tiling (only the batch dim is ever padded in HBM) ---
    b8 = _round_up(B, 8)
    TB = min(_round_up(block_b, 8), b8)
    if TB >= b8 and b8 >= 16:
        # Keep >= 2 grid steps so both v7x TensorCores get work.
        TB = _round_up(b8 // 2, 8)
    B_pad = _round_up(B, TB)
    if B_pad != B:
        x = jnp.pad(x, ((0, B_pad - B), (0, 0)))

    # VMEM budget: double-buffered x/out tiles + (double-buffered) tiny params.
    tile_bytes = 4 * (2 * TB * D + 2 * TB * O)
    param_bytes = 4 * 2 * (2 * M * D + M * D * O_aug)
    approx_vmem = tile_bytes + param_bytes
    try:
        phys_vmem = int(pltpu.get_tpu_info().vmem_capacity_bytes)
    except Exception:
        phys_vmem = 64 << 20          # conservative: v7x per-TC VMEM
    vmem_cap = max(phys_vmem - (16 << 20), 32 << 20)   # leave compiler headroom
    vmem_limit = int(min(max(approx_vmem + (4 << 20), 16 << 20), vmem_cap))

    kernel = _make_anfis_kernel(M, O)
    out = pl.pallas_call(
        kernel,
        out_shape=jax.ShapeDtypeStruct((B_pad, O), jnp.float32),
        grid=(B_pad // TB,),
        in_specs=[
            pl.BlockSpec((TB, D), lambda i: (i, 0)),        # x tile (pipelined)
            pl.BlockSpec((M, D), lambda i: (0, 0)),         # centers (constant)
            pl.BlockSpec((M, D), lambda i: (0, 0)),         # -1/(2*sigma^2+eps) (constant)
            pl.BlockSpec((M, D, O_aug), lambda i: (0, 0, 0)),  # augmented consequents (constant)
        ],
        out_specs=pl.BlockSpec((TB, O), lambda i: (i, 0)),
        compiler_params=pltpu.CompilerParams(
            dimension_semantics=("parallel",),
            vmem_limit_bytes=vmem_limit,
        ),
    )(x, c_pm, n_pm, w_aug)

    return out[:B] if B_pad != B else out


def anfis_forward(x, centers, sigmas, consequents, *, block_b=512):
    """Convenience wrapper: parameter re-layout + kernel call in one go."""
    c_pm, n_pm, w_aug = prepare_anfis_params(centers, sigmas, consequents)
    return anfis_forward_prepared(x, c_pm, n_pm, w_aug, block_b=block_b)


def anfis_reference(x, centers, sigmas, consequents):
    """Pure-JAX reference mirroring the PyTorch module exactly."""
    memb = jnp.exp(-(x[:, :, None] - centers[None]) ** 2
                   / (2.0 * sigmas[None] ** 2 + 1e-6))
    flat = memb.reshape(x.shape[0], -1)
    norm = flat / (jnp.sum(flat, axis=1, keepdims=True) + 1e-6)
    return norm @ consequents


if __name__ == "__main__":
    B, D, M, O = 8, 16, 2, 3   # batch, input_dim, num_mfs, output_dim
    key = jax.random.PRNGKey(0)
    kx, kc, ks, kw = jax.random.split(key, 4)

    x = jax.random.normal(kx, (B, D), dtype=jnp.float32)
    centers = jax.random.uniform(kc, (D, M), dtype=jnp.float32)
    sigmas = jax.random.uniform(ks, (D, M), dtype=jnp.float32)
    consequents = jax.random.uniform(kw, (D * M, O), dtype=jnp.float32)

    out = anfis_forward(x, centers, sigmas, consequents)
    out = jax.block_until_ready(out)

    ref = anfis_reference(x, centers, sigmas, consequents)
    assert out.shape == (B, O)
    assert jnp.allclose(out, ref, atol=1e-5, rtol=1e-5), (out, ref)

    print("KERNEL_OK")
</pallas_src>

<mosaic_0001>
module attributes {stable_mosaic.version = 11 : i64} {
  func.func @kernel(%arg0: i32, %arg1: memref<8x16xf32, #tpu.memory_space<vmem>>, %arg2: memref<2x16xf32, #tpu.memory_space<vmem>>, %arg3: memref<2x16xf32, #tpu.memory_space<vmem>>, %arg4: memref<2x16x4xf32, #tpu.memory_space<vmem>>, %arg5: memref<8x3xf32, #tpu.memory_space<vmem>>) attributes {dimension_semantics = [#tpu.dimension_semantics<parallel>], iteration_bounds = array<i64: 1>, scalar_prefetch = 0 : i64, scratch_operands = 0 : i64, tpu.core_type = #tpu.core_type<tc>, window_params = [{transform_indices = @transform_0, window_bounds = array<i64: 8, 16>}, {pipeline_mode = #tpu.pipeline_mode<synchronous>, transform_indices = @transform_1, window_bounds = array<i64: 2, 16>}, {pipeline_mode = #tpu.pipeline_mode<synchronous>, transform_indices = @transform_2, window_bounds = array<i64: 2, 16>}, {pipeline_mode = #tpu.pipeline_mode<synchronous>, transform_indices = @transform_3, window_bounds = array<i64: 2, 16, 4>}, {transform_indices = @transform_4, window_bounds = array<i64: 8, 3>}]} {
    %c0 = arith.constant 0 : index
    %c0_0 = arith.constant 0 : index
    %0 = vector.load %arg1[%c0, %c0_0] : memref<8x16xf32, #tpu.memory_space<vmem>>, vector<8x16xf32>
    %c0_1 = arith.constant 0 : index
    %c0_2 = arith.constant 0 : index
    %1 = vector.load %arg2[%c0_1, %c0_2] : memref<2x16xf32, #tpu.memory_space<vmem>>, vector<1x16xf32>
    %c0_3 = arith.constant 0 : index
    %c0_4 = arith.constant 0 : index
    %2 = vector.load %arg3[%c0_3, %c0_4] : memref<2x16xf32, #tpu.memory_space<vmem>>, vector<1x16xf32>
    %3 = vector.broadcast %1 : vector<1x16xf32> to vector<8x16xf32>
    %4 = arith.subf %0, %3 : vector<8x16xf32>
    %5 = arith.mulf %4, %4 : vector<8x16xf32>
    %6 = vector.broadcast %2 : vector<1x16xf32> to vector<8x16xf32>
    %7 = arith.mulf %5, %6 : vector<8x16xf32>
    %8 = math.exp %7 : vector<8x16xf32>
    %c0_5 = arith.constant 0 : index
    %c0_6 = arith.constant 0 : index
    %c0_7 = arith.constant 0 : index
    %9 = vector.load %arg4[%c0_5, %c0_6, %c0_7] : memref<2x16x4xf32, #tpu.memory_space<vmem>>, vector<1x16x4xf32>
    %10 = vector.shape_cast %9 : vector<1x16x4xf32> to vector<16x4xf32>
    %cst = arith.constant dense<0.000000e+00> : vector<8x4xf32>
    %11 = tpu.matmul %8, %10, %cst {dimension_numbers = #tpu.dot_dimension_numbers<[1], [0], [0], [1], [0, 0, 1, 1], [], []>} : vector<8x16xf32>, vector<16x4xf32>, vector<8x4xf32> -> vector<8x4xf32>
    %c1 = arith.constant 1 : index
    %c0_8 = arith.constant 0 : index
    %12 = vector.load %arg2[%c1, %c0_8] : memref<2x16xf32, #tpu.memory_space<vmem>>, vector<1x16xf32>
    %c1_9 = arith.constant 1 : index
    %c0_10 = arith.constant 0 : index
    %13 = vector.load %arg3[%c1_9, %c0_10] : memref<2x16xf32, #tpu.memory_space<vmem>>, vector<1x16xf32>
    %14 = vector.broadcast %12 : vector<1x16xf32> to vector<8x16xf32>
    %15 = arith.subf %0, %14 : vector<8x16xf32>
    %16 = arith.mulf %15, %15 : vector<8x16xf32>
    %17 = vector.broadcast %13 : vector<1x16xf32> to vector<8x16xf32>
    %18 = arith.mulf %16, %17 : vector<8x16xf32>
    %19 = math.exp %18 : vector<8x16xf32>
    %c1_11 = arith.constant 1 : index
    %c0_12 = arith.constant 0 : index
    %c0_13 = arith.constant 0 : index
    %20 = vector.load %arg4[%c1_11, %c0_12, %c0_13] : memref<2x16x4xf32, #tpu.memory_space<vmem>>, vector<1x16x4xf32>
    %21 = vector.shape_cast %20 : vector<1x16x4xf32> to vector<16x4xf32>
    %cst_14 = arith.constant dense<0.000000e+00> : vector<8x4xf32>
    %22 = tpu.matmul %19, %21, %cst_14 {dimension_numbers = #tpu.dot_dimension_numbers<[1], [0], [0], [1], [0, 0, 1, 1], [], []>} : vector<8x16xf32>, vector<16x4xf32>, vector<8x4xf32> -> vector<8x4xf32>
    %23 = arith.addf %11, %22 : vector<8x4xf32>
    %24 = vector.extract_strided_slice %23 {offsets = [0, 3], sizes = [8, 1], strides = [1, 1]} : vector<8x4xf32> to vector<8x1xf32>
    %cst_15 = arith.constant 9.99999997E-7 : f32
    %25 = vector.broadcast %cst_15 : f32 to vector<8x1xf32>
    %26 = arith.addf %24, %25 : vector<8x1xf32>
    %27 = tpu.reciprocal %26 : vector<8x1xf32> -> vector<8x1xf32>
    %28 = vector.extract_strided_slice %23 {offsets = [0, 0], sizes = [8, 3], strides = [1, 1]} : vector<8x4xf32> to vector<8x3xf32>
    %29 = vector.broadcast %27 : vector<8x1xf32> to vector<8x3xf32>
    %30 = arith.mulf %28, %29 : vector<8x3xf32>
    %c0_16 = arith.constant 0 : index
    %c0_17 = arith.constant 0 : index
    %31 = vector.load %arg5[%c0_16, %c0_17] : memref<8x3xf32, #tpu.memory_space<vmem>>, vector<8x3xf32>
    tpu.vector_store %arg5[%c0_16, %c0_17], %30 {strides = array<i32>} : memref<8x3xf32, #tpu.memory_space<vmem>>, vector<8x3xf32>,
    return
  }
  func.func @transform_0(%arg0: i32) -> (i32, i32) {
    %c0_i32 = arith.constant 0 : i32
    %c0_i32_0 = arith.constant 0 : i32
    return %arg0, %c0_i32 : i32, i32
  }
  func.func @transform_1(%arg0: i32) -> (i32, i32) {
    %c0_i32 = arith.constant 0 : i32
    %c0_i32_0 = arith.constant 0 : i32
    %c0_i32_1 = arith.constant 0 : i32
    return %c0_i32, %c0_i32_0 : i32, i32
  }
  func.func @transform_2(%arg0: i32) -> (i32, i32) {
    %c0_i32 = arith.constant 0 : i32
    %c0_i32_0 = arith.constant 0 : i32
    %c0_i32_1 = arith.constant 0 : i32
    return %c0_i32, %c0_i32_0 : i32, i32
  }
  func.func @transform_3(%arg0: i32) -> (i32, i32, i32) {
    %c0_i32 = arith.constant 0 : i32
    %c0_i32_0 = arith.constant 0 : i32
    %c0_i32_1 = arith.constant 0 : i32
    %c0_i32_2 = arith.constant 0 : i32
    return %c0_i32, %c0_i32_0, %c0_i32_1 : i32, i32, i32
  }
  func.func @transform_4(%arg0: i32) -> (i32, i32) {
    %c0_i32 = arith.constant 0 : i32
    %c0_i32_0 = arith.constant 0 : i32
    return %arg0, %c0_i32 : i32, i32
  }
}

</mosaic_0001>

<bundles_post_ra>
// kernel: tpu_custom_call.1
= control target key start
LH: loop header
LB: loop body
LE: loop exit
PB: predicated region body
PF: predicated region fallthrough
CT: control target
= control target key end

     0   :  { %vm41_vm0 = vcmask 130048   ;;  %v131_v19 = vmov 3   ;;  %vm109_vm5 = vcmask 23552   ;;  %s187_s3 = inlined_call_operand.vmem [shape: f32[2,16,4], index: 3, kind: input, shape index: {}]   ;;  %s188_s0 = inlined_call_operand.vmem [shape: f32[8,16], index: 0, kind: input, shape index: {}]   ;;  %s189_s1 = inlined_call_operand.vmem [shape: f32[2,16], index: 1, kind: input, shape index: {}]   ;;  %s190_s2 = inlined_call_operand.vmem [shape: f32[2,16], index: 2, kind: input, shape index: {}]   ;;  %s191_s4 = inlined_call_operand.vmem [shape: f32[8,3], index: 4, kind: output, shape index: {}]  }
   0x1   :  { %v116_v0 = vld [vmem:[%s187_s3 + $0x18] sm:$0xff]  ;;  %v28_v1 = vld [vmem:[%s187_s3 + $0x8] sm:$0xff]  ;;  %v115_v2 = vld [vmem:[%s187_s3 + $0x10] sm:$0xff]  ;;  %120 = vset.pattern.permute.xlu0 %v131_v19 }
   0x2   :  { %59 = vmatpush.msra.mxu0 %v116_v0  ;;  %82 = vmatpush.msra.mxu1 %v28_v1  ;;  %v27_v3 = vld [vmem:[%s187_s3] sm:$0xff] }
   0x3   :  { %v17_v4 = vld [vmem:[%s188_s0] sm:$0xff] }
   0x4   :  { %v121_v5 = vld [vmem:[%s189_s1 + $0x1] ss:$0 sm:$0xff]  ;;  %60 = vmatpush.msra.mxu0 %v115_v2  ;;  %83 = vmatpush.msra.mxu1 %v27_v3  ;;  %v123_v6 = vld [vmem:[%s189_s1] ss:$0 sm:$0xff] }
   0x5   :  { %v32_v7 = vsub.f32 %v17_v4, %v121_v5  ;;  %v122_v8 = vld [vmem:[%s190_s2 + $0x1] ss:$0 sm:$0xff]  ;;  %v21_v9 = vsub.f32 %v17_v4, %v123_v6  ;;  %v124_v10 = vld [vmem:[%s190_s2] ss:$0 sm:$0xff] }
   0x7   :  { %v33_v11 = vmul.f32 %v32_v7, %v32_v7  ;;  %v22_v12 = vmul.f32 %v21_v9, %v21_v9 }
   0x9   :  { %v35_v13 = vmul.f32 %v122_v8, %v33_v11  ;;  %v24_v14 = vmul.f32 %v124_v10, %v22_v12 }
   0xb   :  { %v36_v15 = vmul.f32 1.442695, %v35_v13  ;;  %v25_v16 = vmul.f32 1.442695, %v24_v14 }
   0xd   :  { %125 = vpow2.f32 %v36_v15 }
   0xe   :  { %127 = vpow2.f32 %v25_v16 }
  0x13   :  { %v126_v17 = vpop.eup %125 }
  0x14   :  { %v128_v18 = vpop.eup %127  ;;  %117 = vmatmul.msk.f32.vlgmr.msra.gmra.mxu0 %vm41_vm0, %v126_v17 }
  0x15   :  { %118 = vmatmul.msk.f32.vlgmr.msra.gmra.mxu1 %vm41_vm0, %v128_v18 }
  0x91   :  { %v62_v20 = vpop.f32.mrf.mxu0 }
  0x92   :  { %v85_v21 = vpop.f32.mrf.mxu1 }
  0x93   :  { %v86_v22 = vadd.f32 %v85_v21, %v62_v20 }
  0x95   :  { %v88_v23 = vadd.f32 1e-06, %v86_v22 }
  0x97   :  { %129 = vrcp.f32 %v88_v23  ;;  %v100_v27 = vand.u32 2147483648, %v88_v23  ;;  %v98_v29 = vand.u32 2147483647, %v88_v23  ;;  %vm94_vm2 = vweird.f32 %v88_v23 }
  0x99   :  { %v101_v31 = vor.u32 1.1754944e-38, %v100_v27  ;;  %vm99_vm4 = vcmp.eq.f32.partialorder %v98_v29, 8.507059e+37 }
  0x9d   :  { %v130_v24 = vpop.eup %129 }
  0x9e   :  { %v90_v25 = vmul.f32 %v130_v24, %v88_v23  ;;  %vm95_vm1 = vweird.f32 %v130_v24 }
  0x9f   :  { %vm96_vm3 = vmor %vm94_vm2, %vm95_vm1 }
  0xa0   :  { %v91_v26 = vsub.f32 1.0, %v90_v25 }
  0xa2   :  { %v92_v28 = vmul.f32 %v130_v24, %v91_v26 }
  0xa4   :  { %v93_v30 = vadd.f32 %v130_v24, %v92_v28 }
  0xa6   :  { %v97_v32 = vsel %vm96_vm3, %v130_v24, %v93_v30 }
  0xa7   :  { %v102_v33 = vsel %vm99_vm4, %v101_v31, %v97_v32 }
  0xa8   :  { %105 = vperm.xlu0 %120, %v102_v33  }
 0x11a   :  { %v106_v34 = vpop.permute.xlu0 %105 }
 0x11b   :  { %v108_v35 = vmul.f32 %v106_v34, %v86_v22 }
 0x11d   :  { %110 = vst.msk [vmem:[%s191_s4] sm:$0xff] %vm109_vm5, %v108_v35 }

</bundles_post_ra>
